<compile_context>
chip_gen: v7x
topology: tpu7x:2x2x1
jax: 0.10.0
libtpu: 0.0.40
codegen_flags: <defaults>
</compile_context>

<pallas_src>
import functools

import jax
import jax.numpy as jnp
from jax.experimental import pallas as pl
from jax.experimental.pallas import tpu as pltpu

BN_EPS = 1e-5
H0, H1, NCLS = 50, 20, 2


def _round_up(n, m):
    return ((n + m - 1) // m) * m


def _neural_net_kernel(x_ref, w0_ref, w1_ref, w2_ref, p_ref, out_ref, stats_ref,
                       *, batch, tile, padded):
    """grid = (3, num_tiles): phase p OUTER, batch tile i INNER.

    stats_ref (8,128) f32 scratch rows:
      0: sum(h0)  1: sum(h0^2)  2: sum(h1)  3: sum(h1^2)
      4: scale0   5: shift0     6: scale1   7: shift1
    """
    p = pl.program_id(0)
    i = pl.program_id(1)
    f32 = jnp.float32
    inv_b = 1.0 / batch  # divide by the REAL batch size, not the padded one

    # Packed per-feature params: one (8,128) VMEM tile, static row slices.
    g0, be0 = p_ref[0:1, 0:H0], p_ref[1:2, 0:H0]
    g1, be1 = p_ref[2:3, 0:H1], p_ref[3:4, 0:H1]
    b2 = p_ref[4:5, 0:NCLS]

    ones_row = jnp.ones((1, tile), f32)  # MXU column-sum helper (hoisted)

    # Layer-0 pre-activation (bias dropped: cancelled by the BN batch mean).
    # bf16 x / bf16 w0 on the MXU, f32 accumulation.  Recomputed each phase:
    # cheaper than round-tripping h0 through HBM.
    h0 = jnp.dot(x_ref[...], w0_ref[...], preferred_element_type=f32)  # (TB,H0)

    @pl.when(jnp.logical_and(p == 0, i == 0))
    def _init():
        stats_ref[...] = jnp.zeros_like(stats_ref)

    @pl.when(p == 0)
    def _accumulate_layer0_stats():
        # Column sums on the MXU (frees VPU/XLU).  Zero-padded rows of x give
        # all-zero h0 rows (no bias), so they contribute nothing here.
        stats_ref[0:1, 0:H0] += jnp.dot(ones_row, h0, preferred_element_type=f32)
        stats_ref[1:2, 0:H0] += jnp.dot(ones_row, h0 * h0, preferred_element_type=f32)

    @pl.when(jnp.logical_and(p == 1, i == 0))
    def _finalize_layer0_stats():
        mean0 = stats_ref[0:1, 0:H0] * inv_b
        var0 = stats_ref[1:2, 0:H0] * inv_b - mean0 * mean0  # biased var (PyTorch BN)
        scale0 = g0 * jax.lax.rsqrt(var0 + BN_EPS)
        stats_ref[4:5, 0:H0] = scale0
        stats_ref[5:6, 0:H0] = be0 - mean0 * scale0

    # BN0 (folded scale/shift) + ReLU + layer-1 pre-activation.  During phase 0
    # scale0/shift0 are still zero, so this is dead-but-harmless work (tiny next
    # to the x DMA); computing it unconditionally keeps the control flow flat.
    a0 = jnp.maximum(h0 * stats_ref[4:5, 0:H0] + stats_ref[5:6, 0:H0], 0.0)
    h1 = jnp.dot(a0, w1_ref[...], preferred_element_type=f32)  # (TB, H1)

    @pl.when(p == 1)
    def _accumulate_layer1_stats():
        if padded:  # padded rows are NOT zero after BN0's shift -> mask them out
            rows = i * tile + jax.lax.broadcasted_iota(jnp.int32, (tile, 1), 0)
            h1v = jnp.where(rows < batch, h1, 0.0)
        else:
            h1v = h1
        stats_ref[2:3, 0:H1] += jnp.dot(ones_row, h1v, preferred_element_type=f32)
        stats_ref[3:4, 0:H1] += jnp.dot(ones_row, h1v * h1v, preferred_element_type=f32)

    @pl.when(jnp.logical_and(p == 2, i == 0))
    def _finalize_layer1_stats():
        mean1 = stats_ref[2:3, 0:H1] * inv_b
        var1 = stats_ref[3:4, 0:H1] * inv_b - mean1 * mean1
        scale1 = g1 * jax.lax.rsqrt(var1 + BN_EPS)
        stats_ref[6:7, 0:H1] = scale1
        stats_ref[7:8, 0:H1] = be1 - mean1 * scale1

    @pl.when(p == 2)
    def _apply_and_store():
        a1 = jnp.maximum(h1 * stats_ref[6:7, 0:H1] + stats_ref[7:8, 0:H1], 0.0)
        z = jnp.dot(a1, w2_ref[...], preferred_element_type=f32) + b2  # (TB, 2)
        z0, z1 = z[:, 0:1], z[:, 1:2]
        # Closed-form 2-class log-sum-exp: pure VPU/EUP, no lane reductions.
        lse = jnp.maximum(z0, z1) + jnp.log(1.0 + jnp.exp(-jnp.abs(z0 - z1)))
        out_ref[...] = (z - lse).astype(out_ref.dtype)


@functools.partial(jax.jit, static_argnames=("image_size", "tile_batch"))
def neural_net_forward(x, params, *, image_size, tile_batch=4096):
    # PyTorch: x = x.view(-1, self.image_size)
    x = x.reshape(-1, image_size)
    b = x.shape[0]

    # Batch tile: biggest tile <= tile_batch (multiple of 16 for the bf16
    # sublane tiling when there is more than one tile; a single full-array
    # block is exempt).
    tb = _round_up(b, 8)
    if tb > tile_batch:
        tb = max(16, (tile_batch // 16) * 16)
    bp = _round_up(b, tb)
    n_tiles = bp // tb

    # bf16 for the dominant HBM stream (x) + first-layer weights; BN stats,
    # scale/shift and softmax math stay f32.
    x = x.astype(jnp.bfloat16)
    if bp != b:
        x = jnp.pad(x, ((0, bp - b), (0, 0)))
    w0 = params["w0"].astype(jnp.bfloat16)
    w1 = params["w1"].astype(jnp.float32)
    w2 = params["w2"].astype(jnp.float32)

    # Pack the five tiny per-feature vectors into one (8,128) tile:
    #   row 0: gamma0[50]  1: beta0[50]  2: gamma1[20]  3: beta1[20]  4: b2[2]
    packed = jnp.zeros((8, 128), jnp.float32)
    packed = packed.at[0, 0:H0].set(params["g0"].reshape(H0))
    packed = packed.at[1, 0:H0].set(params["be0"].reshape(H0))
    packed = packed.at[2, 0:H1].set(params["g1"].reshape(H1))
    packed = packed.at[3, 0:H1].set(params["be1"].reshape(H1))
    packed = packed.at[4, 0:NCLS].set(params["b2"].reshape(NCLS))

    kernel = functools.partial(_neural_net_kernel, batch=b, tile=tb,
                               padded=(bp != b))

    out = pl.pallas_call(
        kernel,
        out_shape=jax.ShapeDtypeStruct((bp, NCLS), jnp.float32),
        grid_spec=pltpu.PrefetchScalarGridSpec(
            num_scalar_prefetch=0,
            grid=(3, n_tiles),  # (phase, batch tile); last axis is innermost
            in_specs=[
                pl.BlockSpec((tb, image_size), lambda p, i: (i, 0)),   # x (bf16)
                pl.BlockSpec((image_size, H0), lambda p, i: (0, 0)),   # w0 (bf16)
                pl.BlockSpec((H0, H1), lambda p, i: (0, 0)),           # w1
                pl.BlockSpec((H1, NCLS), lambda p, i: (0, 0)),         # w2
                pl.BlockSpec((8, 128), lambda p, i: (0, 0)),           # packed params
            ],
            out_specs=pl.BlockSpec((tb, NCLS), lambda p, i: (i, 0)),
            scratch_shapes=[pltpu.VMEM((8, 128), jnp.float32)],        # BN stats
        ),
        compiler_params=pltpu.CompilerParams(
            # The shared stats accumulator serializes both axes.
            dimension_semantics=("arbitrary", "arbitrary"),
            # Budget: tb=4096 -> ~1 MiB x-in, ~4 MiB out buffers, ~10-12 MiB of
            # lane-padded f32 intermediates: well inside 48 MiB on v5e/v6e/v7x.
            vmem_limit_bytes=48 * 1024 * 1024,
        ),
    )(x, w0, w1, w2, packed)
    return out[:b]


def init_params(key, image_size):
    """Deterministic init matching the PyTorch module's parameter shapes.
    Linear: uniform(-1/sqrt(fan_in), 1/sqrt(fan_in)); BN: gamma=1, beta=0."""
    def linear(key, fan_in, fan_out):
        kw, kb = jax.random.split(key)
        bound = 1.0 / jnp.sqrt(fan_in)
        w = jax.random.uniform(kw, (fan_in, fan_out), jnp.float32, -bound, bound)
        b = jax.random.uniform(kb, (1, fan_out), jnp.float32, -bound, bound)
        return w, b

    k0, k1, k2 = jax.random.split(key, 3)
    w0, b0 = linear(k0, image_size, H0)
    w1, b1 = linear(k1, H0, H1)
    w2, b2 = linear(k2, H1, NCLS)
    return {
        "w0": w0, "b0": b0,
        "g0": jnp.ones((1, H0), jnp.float32), "be0": jnp.zeros((1, H0), jnp.float32),
        "w1": w1, "b1": b1,
        "g1": jnp.ones((1, H1), jnp.float32), "be1": jnp.zeros((1, H1), jnp.float32),
        "w2": w2, "b2": b2,
    }


def _reference_forward(x, params, image_size, emulate_bf16=False):
    """Pure-JAX reference.  KEEPS the pre-BN biases (like the PyTorch module)
    to validate that dropping them in the kernel is equivalent.  With
    emulate_bf16=True it mimics the kernel's bf16 rounding of x / w0."""
    hi = jax.lax.Precision.HIGHEST
    x = x.reshape(-1, image_size).astype(jnp.float32)
    w0 = params["w0"]
    if emulate_bf16:
        x = x.astype(jnp.bfloat16).astype(jnp.float32)
        w0 = w0.astype(jnp.bfloat16).astype(jnp.float32)

    def bn(h, g, be):
        mu = jnp.mean(h, axis=0, keepdims=True)
        var = jnp.mean((h - mu) ** 2, axis=0, keepdims=True)
        return (h - mu) / jnp.sqrt(var + BN_EPS) * g + be

    h = jnp.maximum(bn(jnp.dot(x, w0, precision=hi) + params["b0"],
                       params["g0"], params["be0"]), 0.0)
    h = jnp.maximum(bn(jnp.dot(h, params["w1"], precision=hi) + params["b1"],
                       params["g1"], params["be1"]), 0.0)
    z = jnp.dot(h, params["w2"], precision=hi) + params["b2"]
    return jax.nn.log_softmax(z, axis=-1)


if __name__ == "__main__":
    IMAGE_SIZE = 64

    key = jax.random.PRNGKey(0)
    kx, kp = jax.random.split(key)
    params = init_params(kp, IMAGE_SIZE)

    # Case 1: small batch -> single tile, grid (3 phases, 1 tile).
    x_small = jax.random.normal(kx, (8, IMAGE_SIZE), jnp.float32)
    out_small = jax.block_until_ready(
        neural_net_forward(x_small, params, image_size=IMAGE_SIZE))
    assert out_small.shape == (8, NCLS)

    # Case 2: multi-tile grid with a padded last tile (B=300, tile_batch=128).
    x_big = jax.random.normal(jax.random.fold_in(kx, 1), (300, IMAGE_SIZE),
                              jnp.float32)
    out_big = jax.block_until_ready(
        neural_net_forward(x_big, params, image_size=IMAGE_SIZE, tile_batch=128))
    assert out_big.shape == (300, NCLS)

    for x, out in ((x_small, out_small), (x_big, out_big)):
        # Tight check vs. a reference that emulates the kernel's bf16 x/w0 cast
        # (validates bias drop, global two-pass BN, tiling/masking, closed-form
        # log_softmax).
        ref_bf16 = _reference_forward(x, params, IMAGE_SIZE, emulate_bf16=True)
        assert jnp.max(jnp.abs(out - ref_bf16)) < 2e-2, "mismatch vs bf16-emulated ref"
        # Loose check vs. the full-f32, PyTorch-faithful reference (bf16 input
        # rounding is the only intentional deviation).
        ref_f32 = _reference_forward(x, params, IMAGE_SIZE, emulate_bf16=False)
        assert jnp.max(jnp.abs(out - ref_f32)) < 1e-1, "mismatch vs f32 reference"

    print("KERNEL_OK")
</pallas_src>

<mosaic_0001>
module attributes {stable_mosaic.version = 11 : i64} {
  func.func @_neural_net_kernel(%arg0: i32, %arg1: i32, %arg2: memref<8x64xbf16, #tpu.memory_space<vmem>>, %arg3: memref<64x50xbf16, #tpu.memory_space<vmem>>, %arg4: memref<50x20xf32, #tpu.memory_space<vmem>>, %arg5: memref<20x2xf32, #tpu.memory_space<vmem>>, %arg6: memref<8x128xf32, #tpu.memory_space<vmem>>, %arg7: memref<8x2xf32, #tpu.memory_space<vmem>>, %arg8: memref<8x128xf32, #tpu.memory_space<vmem>>) attributes {dimension_semantics = [#tpu.dimension_semantics<arbitrary>, #tpu.dimension_semantics<arbitrary>], iteration_bounds = array<i64: 3, 1>, scalar_prefetch = 0 : i64, scratch_operands = 1 : i64, tpu.core_type = #tpu.core_type<tc>, window_params = [{transform_indices = @transform_0, window_bounds = array<i64: 8, 64>}, {pipeline_mode = #tpu.pipeline_mode<synchronous>, transform_indices = @transform_1, window_bounds = array<i64: 64, 50>}, {pipeline_mode = #tpu.pipeline_mode<synchronous>, transform_indices = @transform_2, window_bounds = array<i64: 50, 20>}, {pipeline_mode = #tpu.pipeline_mode<synchronous>, transform_indices = @transform_3, window_bounds = array<i64: 20, 2>}, {pipeline_mode = #tpu.pipeline_mode<synchronous>, transform_indices = @transform_4, window_bounds = array<i64: 8, 128>}, {transform_indices = @transform_5, window_bounds = array<i64: 8, 2>}]} {
    %c0 = arith.constant 0 : index
    %c0_0 = arith.constant 0 : index
    %0 = vector.load %arg6[%c0, %c0_0] : memref<8x128xf32, #tpu.memory_space<vmem>>, vector<1x50xf32>
    %c1 = arith.constant 1 : index
    %c0_1 = arith.constant 0 : index
    %1 = vector.load %arg6[%c1, %c0_1] : memref<8x128xf32, #tpu.memory_space<vmem>>, vector<1x50xf32>
    %c2 = arith.constant 2 : index
    %c0_2 = arith.constant 0 : index
    %2 = vector.load %arg6[%c2, %c0_2] : memref<8x128xf32, #tpu.memory_space<vmem>>, vector<1x20xf32>
    %c3 = arith.constant 3 : index
    %c0_3 = arith.constant 0 : index
    %3 = vector.load %arg6[%c3, %c0_3] : memref<8x128xf32, #tpu.memory_space<vmem>>, vector<1x20xf32>
    %c4 = arith.constant 4 : index
    %c0_4 = arith.constant 0 : index
    %4 = vector.load %arg6[%c4, %c0_4] : memref<8x128xf32, #tpu.memory_space<vmem>>, vector<1x2xf32>
    %cst = arith.constant 1.000000e+00 : f32
    %5 = vector.broadcast %cst : f32 to vector<1x8xf32>
    %c0_5 = arith.constant 0 : index
    %c0_6 = arith.constant 0 : index
    %6 = vector.load %arg2[%c0_5, %c0_6] : memref<8x64xbf16, #tpu.memory_space<vmem>>, vector<8x64xbf16>
    %c0_7 = arith.constant 0 : index
    %c0_8 = arith.constant 0 : index
    %7 = vector.load %arg3[%c0_7, %c0_8] : memref<64x50xbf16, #tpu.memory_space<vmem>>, vector<64x50xbf16>
    %cst_9 = arith.constant dense<0.000000e+00> : vector<8x50xf32>
    %8 = tpu.matmul %6, %7, %cst_9 {dimension_numbers = #tpu.dot_dimension_numbers<[1], [0], [0], [1], [0, 0, 1, 1], [], []>} : vector<8x64xbf16>, vector<64x50xbf16>, vector<8x50xf32> -> vector<8x50xf32>
    %c0_i32 = arith.constant 0 : i32
    %9 = arith.cmpi eq, %arg0, %c0_i32 : i32
    %c0_i32_10 = arith.constant 0 : i32
    %10 = arith.cmpi eq, %arg1, %c0_i32_10 : i32
    %11 = arith.andi %9, %10 : i1
    %12 = arith.extui %11 : i1 to i32
    %c0_i32_11 = arith.constant 0 : i32
    %13 = arith.cmpi ne, %12, %c0_i32_11 : i32
    scf.if %13 {
      %cst_29 = arith.constant 0.000000e+00 : f32
      %43 = vector.broadcast %cst_29 : f32 to vector<8x128xf32>
      %c0_30 = arith.constant 0 : index
      %c0_31 = arith.constant 0 : index
      %44 = vector.load %arg8[%c0_30, %c0_31] : memref<8x128xf32, #tpu.memory_space<vmem>>, vector<8x128xf32>
      tpu.vector_store %arg8[%c0_30, %c0_31], %43 {strides = array<i32>} : memref<8x128xf32, #tpu.memory_space<vmem>>, vector<8x128xf32>,
    } else {
    }
    %c0_i32_12 = arith.constant 0 : i32
    %14 = arith.cmpi eq, %arg0, %c0_i32_12 : i32
    %15 = arith.extui %14 : i1 to i32
    %c0_i32_13 = arith.constant 0 : i32
    %16 = arith.cmpi ne, %15, %c0_i32_13 : i32
    scf.if %16 {
      %c0_29 = arith.constant 0 : index
      %c0_30 = arith.constant 0 : index
      %43 = vector.load %arg8[%c0_29, %c0_30] : memref<8x128xf32, #tpu.memory_space<vmem>>, vector<1x50xf32>
      %cst_31 = arith.constant dense<0.000000e+00> : vector<1x50xf32>
      %44 = tpu.matmul %5, %8, %cst_31 {dimension_numbers = #tpu.dot_dimension_numbers<[1], [0], [0], [1], [0, 0, 1, 1], [], []>} : vector<1x8xf32>, vector<8x50xf32>, vector<1x50xf32> -> vector<1x50xf32>
      %45 = arith.addf %43, %44 : vector<1x50xf32>
      %c0_32 = arith.constant 0 : index
      %c0_33 = arith.constant 0 : index
      %46 = vector.load %arg8[%c0_32, %c0_33] : memref<8x128xf32, #tpu.memory_space<vmem>>, vector<1x50xf32>
      tpu.vector_store %arg8[%c0_32, %c0_33], %45 {strides = array<i32>} : memref<8x128xf32, #tpu.memory_space<vmem>>, vector<1x50xf32>,
      %c1_34 = arith.constant 1 : index
      %c0_35 = arith.constant 0 : index
      %47 = vector.load %arg8[%c1_34, %c0_35] : memref<8x128xf32, #tpu.memory_space<vmem>>, vector<1x50xf32>
      %48 = arith.mulf %8, %8 : vector<8x50xf32>
      %cst_36 = arith.constant dense<0.000000e+00> : vector<1x50xf32>
      %49 = tpu.matmul %5, %48, %cst_36 {dimension_numbers = #tpu.dot_dimension_numbers<[1], [0], [0], [1], [0, 0, 1, 1], [], []>} : vector<1x8xf32>, vector<8x50xf32>, vector<1x50xf32> -> vector<1x50xf32>
      %50 = arith.addf %47, %49 : vector<1x50xf32>
      %c1_37 = arith.constant 1 : index
      %c0_38 = arith.constant 0 : index
      %51 = vector.load %arg8[%c1_37, %c0_38] : memref<8x128xf32, #tpu.memory_space<vmem>>, vector<1x50xf32>
      tpu.vector_store %arg8[%c1_37, %c0_38], %50 {strides = array<i32>} : memref<8x128xf32, #tpu.memory_space<vmem>>, vector<1x50xf32>,
    } else {
    }
    %c1_i32 = arith.constant 1 : i32
    %17 = arith.cmpi eq, %arg0, %c1_i32 : i32
    %c0_i32_14 = arith.constant 0 : i32
    %18 = arith.cmpi eq, %arg1, %c0_i32_14 : i32
    %19 = arith.andi %17, %18 : i1
    %20 = arith.extui %19 : i1 to i32
    %c0_i32_15 = arith.constant 0 : i32
    %21 = arith.cmpi ne, %20, %c0_i32_15 : i32
    scf.if %21 {
      %c0_29 = arith.constant 0 : index
      %c0_30 = arith.constant 0 : index
      %43 = vector.load %arg8[%c0_29, %c0_30] : memref<8x128xf32, #tpu.memory_space<vmem>>, vector<1x50xf32>
      %cst_31 = arith.constant 1.250000e-01 : f32
      %44 = vector.broadcast %cst_31 : f32 to vector<1x50xf32>
      %45 = arith.mulf %43, %44 : vector<1x50xf32>
      %c1_32 = arith.constant 1 : index
      %c0_33 = arith.constant 0 : index
      %46 = vector.load %arg8[%c1_32, %c0_33] : memref<8x128xf32, #tpu.memory_space<vmem>>, vector<1x50xf32>
      %cst_34 = arith.constant 1.250000e-01 : f32
      %47 = vector.broadcast %cst_34 : f32 to vector<1x50xf32>
      %48 = arith.mulf %46, %47 : vector<1x50xf32>
      %49 = arith.mulf %45, %45 : vector<1x50xf32>
      %50 = arith.subf %48, %49 : vector<1x50xf32>
      %cst_35 = arith.constant 9.99999974E-6 : f32
      %51 = vector.broadcast %cst_35 : f32 to vector<1x50xf32>
      %52 = arith.addf %50, %51 : vector<1x50xf32>
      %53 = math.rsqrt %52 : vector<1x50xf32>
      %54 = arith.mulf %0, %53 : vector<1x50xf32>
      %c4_36 = arith.constant 4 : index
      %c0_37 = arith.constant 0 : index
      %55 = vector.load %arg8[%c4_36, %c0_37] : memref<8x128xf32, #tpu.memory_space<vmem>>, vector<1x50xf32>
      tpu.vector_store %arg8[%c4_36, %c0_37], %54 {strides = array<i32>} : memref<8x128xf32, #tpu.memory_space<vmem>>, vector<1x50xf32>,
      %56 = arith.mulf %45, %54 : vector<1x50xf32>
      %57 = arith.subf %1, %56 : vector<1x50xf32>
      %c5_38 = arith.constant 5 : index
      %c0_39 = arith.constant 0 : index
      %58 = vector.load %arg8[%c5_38, %c0_39] : memref<8x128xf32, #tpu.memory_space<vmem>>, vector<1x50xf32>
      tpu.vector_store %arg8[%c5_38, %c0_39], %57 {strides = array<i32>} : memref<8x128xf32, #tpu.memory_space<vmem>>, vector<1x50xf32>,
    } else {
    }
    %c4_16 = arith.constant 4 : index
    %c0_17 = arith.constant 0 : index
    %22 = vector.load %arg8[%c4_16, %c0_17] : memref<8x128xf32, #tpu.memory_space<vmem>>, vector<1x50xf32>
    %23 = vector.broadcast %22 : vector<1x50xf32> to vector<8x50xf32>
    %24 = arith.mulf %8, %23 : vector<8x50xf32>
    %c5 = arith.constant 5 : index
    %c0_18 = arith.constant 0 : index
    %25 = vector.load %arg8[%c5, %c0_18] : memref<8x128xf32, #tpu.memory_space<vmem>>, vector<1x50xf32>
    %26 = vector.broadcast %25 : vector<1x50xf32> to vector<8x50xf32>
    %27 = arith.addf %24, %26 : vector<8x50xf32>
    %cst_19 = arith.constant 0.000000e+00 : f32
    %28 = vector.broadcast %cst_19 : f32 to vector<8x50xf32>
    %29 = arith.maximumf %27, %28 : vector<8x50xf32>
    %c0_20 = arith.constant 0 : index
    %c0_21 = arith.constant 0 : index
    %30 = vector.load %arg4[%c0_20, %c0_21] : memref<50x20xf32, #tpu.memory_space<vmem>>, vector<50x20xf32>
    %cst_22 = arith.constant dense<0.000000e+00> : vector<8x20xf32>
    %31 = tpu.matmul %29, %30, %cst_22 {dimension_numbers = #tpu.dot_dimension_numbers<[1], [0], [0], [1], [0, 0, 1, 1], [], []>} : vector<8x50xf32>, vector<50x20xf32>, vector<8x20xf32> -> vector<8x20xf32>
    %c1_i32_23 = arith.constant 1 : i32
    %32 = arith.cmpi eq, %arg0, %c1_i32_23 : i32
    %33 = arith.extui %32 : i1 to i32
    %c0_i32_24 = arith.constant 0 : i32
    %34 = arith.cmpi ne, %33, %c0_i32_24 : i32
    scf.if %34 {
      %c2_29 = arith.constant 2 : index
      %c0_30 = arith.constant 0 : index
      %43 = vector.load %arg8[%c2_29, %c0_30] : memref<8x128xf32, #tpu.memory_space<vmem>>, vector<1x20xf32>
      %cst_31 = arith.constant dense<0.000000e+00> : vector<1x20xf32>
      %44 = tpu.matmul %5, %31, %cst_31 {dimension_numbers = #tpu.dot_dimension_numbers<[1], [0], [0], [1], [0, 0, 1, 1], [], []>} : vector<1x8xf32>, vector<8x20xf32>, vector<1x20xf32> -> vector<1x20xf32>
      %45 = arith.addf %43, %44 : vector<1x20xf32>
      %c2_32 = arith.constant 2 : index
      %c0_33 = arith.constant 0 : index
      %46 = vector.load %arg8[%c2_32, %c0_33] : memref<8x128xf32, #tpu.memory_space<vmem>>, vector<1x20xf32>
      tpu.vector_store %arg8[%c2_32, %c0_33], %45 {strides = array<i32>} : memref<8x128xf32, #tpu.memory_space<vmem>>, vector<1x20xf32>,
      %c3_34 = arith.constant 3 : index
      %c0_35 = arith.constant 0 : index
      %47 = vector.load %arg8[%c3_34, %c0_35] : memref<8x128xf32, #tpu.memory_space<vmem>>, vector<1x20xf32>
      %48 = arith.mulf %31, %31 : vector<8x20xf32>
      %cst_36 = arith.constant dense<0.000000e+00> : vector<1x20xf32>
      %49 = tpu.matmul %5, %48, %cst_36 {dimension_numbers = #tpu.dot_dimension_numbers<[1], [0], [0], [1], [0, 0, 1, 1], [], []>} : vector<1x8xf32>, vector<8x20xf32>, vector<1x20xf32> -> vector<1x20xf32>
      %50 = arith.addf %47, %49 : vector<1x20xf32>
      %c3_37 = arith.constant 3 : index
      %c0_38 = arith.constant 0 : index
      %51 = vector.load %arg8[%c3_37, %c0_38] : memref<8x128xf32, #tpu.memory_space<vmem>>, vector<1x20xf32>
      tpu.vector_store %arg8[%c3_37, %c0_38], %50 {strides = array<i32>} : memref<8x128xf32, #tpu.memory_space<vmem>>, vector<1x20xf32>,
    } else {
    }
    %c2_i32 = arith.constant 2 : i32
    %35 = arith.cmpi eq, %arg0, %c2_i32 : i32
    %c0_i32_25 = arith.constant 0 : i32
    %36 = arith.cmpi eq, %arg1, %c0_i32_25 : i32
    %37 = arith.andi %35, %36 : i1
    %38 = arith.extui %37 : i1 to i32
    %c0_i32_26 = arith.constant 0 : i32
    %39 = arith.cmpi ne, %38, %c0_i32_26 : i32
    scf.if %39 {
      %c2_29 = arith.constant 2 : index
      %c0_30 = arith.constant 0 : index
      %43 = vector.load %arg8[%c2_29, %c0_30] : memref<8x128xf32, #tpu.memory_space<vmem>>, vector<1x20xf32>
      %cst_31 = arith.constant 1.250000e-01 : f32
      %44 = vector.broadcast %cst_31 : f32 to vector<1x20xf32>
      %45 = arith.mulf %43, %44 : vector<1x20xf32>
      %c3_32 = arith.constant 3 : index
      %c0_33 = arith.constant 0 : index
      %46 = vector.load %arg8[%c3_32, %c0_33] : memref<8x128xf32, #tpu.memory_space<vmem>>, vector<1x20xf32>
      %cst_34 = arith.constant 1.250000e-01 : f32
      %47 = vector.broadcast %cst_34 : f32 to vector<1x20xf32>
      %48 = arith.mulf %46, %47 : vector<1x20xf32>
      %49 = arith.mulf %45, %45 : vector<1x20xf32>
      %50 = arith.subf %48, %49 : vector<1x20xf32>
      %cst_35 = arith.constant 9.99999974E-6 : f32
      %51 = vector.broadcast %cst_35 : f32 to vector<1x20xf32>
      %52 = arith.addf %50, %51 : vector<1x20xf32>
      %53 = math.rsqrt %52 : vector<1x20xf32>
      %54 = arith.mulf %2, %53 : vector<1x20xf32>
      %c6 = arith.constant 6 : index
      %c0_36 = arith.constant 0 : index
      %55 = vector.load %arg8[%c6, %c0_36] : memref<8x128xf32, #tpu.memory_space<vmem>>, vector<1x20xf32>
      tpu.vector_store %arg8[%c6, %c0_36], %54 {strides = array<i32>} : memref<8x128xf32, #tpu.memory_space<vmem>>, vector<1x20xf32>,
      %56 = arith.mulf %45, %54 : vector<1x20xf32>
      %57 = arith.subf %3, %56 : vector<1x20xf32>
      %c7 = arith.constant 7 : index
      %c0_37 = arith.constant 0 : index
      %58 = vector.load %arg8[%c7, %c0_37] : memref<8x128xf32, #tpu.memory_space<vmem>>, vector<1x20xf32>
      tpu.vector_store %arg8[%c7, %c0_37], %57 {strides = array<i32>} : memref<8x128xf32, #tpu.memory_space<vmem>>, vector<1x20xf32>,
    } else {
    }
    %c2_i32_27 = arith.constant 2 : i32
    %40 = arith.cmpi eq, %arg0, %c2_i32_27 : i32
    %41 = arith.extui %40 : i1 to i32
    %c0_i32_28 = arith.constant 0 : i32
    %42 = arith.cmpi ne, %41, %c0_i32_28 : i32
    scf.if %42 {
      %c6 = arith.constant 6 : index
      %c0_29 = arith.constant 0 : index
      %43 = vector.load %arg8[%c6, %c0_29] : memref<8x128xf32, #tpu.memory_space<vmem>>, vector<1x20xf32>
      %44 = vector.broadcast %43 : vector<1x20xf32> to vector<8x20xf32>
      %45 = arith.mulf %31, %44 : vector<8x20xf32>
      %c7 = arith.constant 7 : index
      %c0_30 = arith.constant 0 : index
      %46 = vector.load %arg8[%c7, %c0_30] : memref<8x128xf32, #tpu.memory_space<vmem>>, vector<1x20xf32>
      %47 = vector.broadcast %46 : vector<1x20xf32> to vector<8x20xf32>
      %48 = arith.addf %45, %47 : vector<8x20xf32>
      %cst_31 = arith.constant 0.000000e+00 : f32
      %49 = vector.broadcast %cst_31 : f32 to vector<8x20xf32>
      %50 = arith.maximumf %48, %49 : vector<8x20xf32>
      %c0_32 = arith.constant 0 : index
      %c0_33 = arith.constant 0 : index
      %51 = vector.load %arg5[%c0_32, %c0_33] : memref<20x2xf32, #tpu.memory_space<vmem>>, vector<20x2xf32>
      %cst_34 = arith.constant dense<0.000000e+00> : vector<8x2xf32>
      %52 = tpu.matmul %50, %51, %cst_34 {dimension_numbers = #tpu.dot_dimension_numbers<[1], [0], [0], [1], [0, 0, 1, 1], [], []>} : vector<8x20xf32>, vector<20x2xf32>, vector<8x2xf32> -> vector<8x2xf32>
      %53 = vector.broadcast %4 : vector<1x2xf32> to vector<8x2xf32>
      %54 = arith.addf %52, %53 : vector<8x2xf32>
      %55 = vector.extract_strided_slice %54 {offsets = [0, 0], sizes = [8, 1], strides = [1, 1]} : vector<8x2xf32> to vector<8x1xf32>
      %56 = vector.extract_strided_slice %54 {offsets = [0, 1], sizes = [8, 1], strides = [1, 1]} : vector<8x2xf32> to vector<8x1xf32>
      %57 = arith.maximumf %55, %56 : vector<8x1xf32>
      %58 = arith.subf %55, %56 : vector<8x1xf32>
      %59 = math.absf %58 : vector<8x1xf32>
      %cst_35 = arith.constant 0.000000e+00 : f32
      %60 = vector.broadcast %cst_35 : f32 to vector<8x1xf32>
      %61 = arith.subf %60, %59 : vector<8x1xf32>
      %62 = math.exp %61 : vector<8x1xf32>
      %cst_36 = arith.constant 1.000000e+00 : f32
      %63 = vector.broadcast %cst_36 : f32 to vector<8x1xf32>
      %64 = arith.addf %63, %62 : vector<8x1xf32>
      %65 = math.log %64 : vector<8x1xf32>
      %66 = arith.addf %57, %65 : vector<8x1xf32>
      %67 = vector.broadcast %66 : vector<8x1xf32> to vector<8x2xf32>
      %68 = arith.subf %54, %67 : vector<8x2xf32>
      %c0_37 = arith.constant 0 : index
      %c0_38 = arith.constant 0 : index
      %69 = vector.load %arg7[%c0_37, %c0_38] : memref<8x2xf32, #tpu.memory_space<vmem>>, vector<8x2xf32>
      tpu.vector_store %arg7[%c0_37, %c0_38], %68 {strides = array<i32>} : memref<8x2xf32, #tpu.memory_space<vmem>>, vector<8x2xf32>,
    } else {
    }
    return
  }
  func.func @transform_0(%arg0: i32, %arg1: i32) -> (i32, i32) {
    %c0_i32 = arith.constant 0 : i32
    %c0_i32_0 = arith.constant 0 : i32
    return %arg1, %c0_i32 : i32, i32
  }
  func.func @transform_1(%arg0: i32, %arg1: i32) -> (i32, i32) {
    %c0_i32 = arith.constant 0 : i32
    %c0_i32_0 = arith.constant 0 : i32
    %c0_i32_1 = arith.constant 0 : i32
    return %c0_i32, %c0_i32_0 : i32, i32
  }
  func.func @transform_2(%arg0: i32, %arg1: i32) -> (i32, i32) {
    %c0_i32 = arith.constant 0 : i32
    %c0_i32_0 = arith.constant 0 : i32
    %c0_i32_1 = arith.constant 0 : i32
    return %c0_i32, %c0_i32_0 : i32, i32
  }
  func.func @transform_3(%arg0: i32, %arg1: i32) -> (i32, i32) {
    %c0_i32 = arith.constant 0 : i32
    %c0_i32_0 = arith.constant 0 : i32
    %c0_i32_1 = arith.constant 0 : i32
    return %c0_i32, %c0_i32_0 : i32, i32
  }
  func.func @transform_4(%arg0: i32, %arg1: i32) -> (i32, i32) {
    %c0_i32 = arith.constant 0 : i32
    %c0_i32_0 = arith.constant 0 : i32
    %c0_i32_1 = arith.constant 0 : i32
    return %c0_i32, %c0_i32_0 : i32, i32
  }
  func.func @transform_5(%arg0: i32, %arg1: i32) -> (i32, i32) {
    %c0_i32 = arith.constant 0 : i32
    %c0_i32_0 = arith.constant 0 : i32
    return %arg1, %c0_i32 : i32, i32
  }
}

</mosaic_0001>

<bundles_post_ra>
// kernel: neural_net_forward.1
= control target key start
LH: loop header
LB: loop body
LE: loop exit
PB: predicated region body
PF: predicated region fallthrough
CT: control target
= control target key end

     0   :  { %s1203_s18 = smov 0   ;;  %s1205_s19 = smov 0   ;;  %s1331_s0 = inlined_call_operand.vmem [shape: bf16[8,64], index: 0, kind: input, shape index: {}]   ;;  %s1332_s1 = inlined_call_operand.vmem [shape: bf16[64,50], index: 1, kind: input, shape index: {}]   ;;  %s1333_s2 = inlined_call_operand.vmem [shape: f32[50,20], index: 2, kind: input, shape index: {}]   ;;  %s1334_s3 = inlined_call_operand.vmem [shape: f32[20,2], index: 3, kind: input, shape index: {}]   ;;  %s1335_s4 = inlined_call_operand.vmem [shape: f32[8,128], index: 4, kind: input, shape index: {}]   ;;  %s1336_s5 = inlined_call_operand.vmem [shape: f32[8,2], index: 5, kind: output, shape index: {}]  }
   0x1   :  { %s1207_s20 = smov 0  }
   0x2 LB: > { %s27_s21 = sadd.s32 1, %s1152_s19  ;;  %p956_p0 = scmp.ge.s32.totalorder %s1156_s20, 1  ;;  %s1156_s20 = sphi %s1207_s20, %s15_s20   ;;  %s1152_s19 = sphi %s1205_s19, %s1338_s19   ;;  %s1148_s18 = sphi %s1203_s18, %s1337_s18  }
   0x3   : > { %p29_p1 = scmp.ge.s32.totalorder %s27_s21, 3  ;;  %p198_p2 = scmp.lt.s32.totalorder %s1156_s20, 4 }
   0x5   : > { %s1340_s21 = smov (%p29_p1, %s27_s21), 0  ;;  %p199_p3 = pnand %p956_p0, %p198_p2 }
   0x6   : > { %v1226_v0 = vld [vmem:[%s1335_s4] sm:$0x1] (!%p199_p3)  ;;  %v1231_v1 = vld [vmem:[%s1335_s4 + $0x1] sm:$0x1] (!%p199_p3)  ;;  %v1236_v2 = vld [vmem:[%s1335_s4 + $0x2] sm:$0x1] (!%p199_p3) }
   0x7   : > { %202 = sbr.rel (%p199_p3) target bundleno = 1476 (0x5c4), region = 40  ;;  %v1241_v3 = vld [vmem:[%s1335_s4 + $0x3] sm:$0x1] (!%p199_p3)  ;;  %v1246_v4 = vld [vmem:[%s1335_s4 + $0x4] ss:$0 sm:$0xff] (!%p199_p3)  ;;  %v1158_v6 = vmov (!%p199_p3), 0.0  }
   0x8   : > { %v1121_v5 = vld [vmem:[%s1332_s1] sm:$0xff] (!%p199_p3)   ;;  %1012 = vmatprep.subr.bf16.mxu0 (!%p199_p3), %v1158_v6  ;;  %v1122_v7 = vld [vmem:[%s1332_s1 + $0x8] sm:$0xff] (!%p199_p3)   ;;  %vm1159_vm0 = vmmov (!%p199_p3), 0   ;;  %v1123_v8 = vld [vmem:[%s1332_s1 + $0x10] sm:$0xff] (!%p199_p3)   ;;  %vm271_vm1 = vcmask (!%p199_p3), 523264   ;;  %p315_p4 = scmp.eq.s32.totalorder (!%p199_p3), %s1148_s18, 0 }
   0x9   : > { %1013 = vmatpush3.bf16.msra.mxu0 (!%p199_p3), %v1121_v5  ;;  %1020 = vmatprep.mubr.msk.bf16.mxu0 (!%p199_p3), %vm1159_vm0, %v1158_v6  ;;  %v1124_v9 = vld [vmem:[%s1332_s1 + $0x18] sm:$0xff] (!%p199_p3)   ;;  %v238_v10 = vld [vmem:[%s1331_s0] sm:$0xf] (!%p199_p3) }
   0xa   : > { %1014 = vmatprep.subr.bf16.mxu0 (!%p199_p3), %v1158_v6 }
   0xd   : > { %1015 = vmatpush3.bf16.msra.mxu0 (!%p199_p3), %v1122_v7 }
   0xe   : > { %1016 = vmatprep.subr.bf16.mxu0 %v1158_v6  ;;  %v1160_v15 = vmov (%p315_p4), 0.0  }
   0xf   : > { %321 = vst [vmem:[#allocation2] sm:$0xff] (%p315_p4), %v1160_v15 }
  0x11   : > { %1017 = vmatpush3.bf16.msra.mxu0 %v1123_v8 }
  0x12   : > { %1018 = vmatprep.subr.bf16.mxu0 %v1158_v6 }
  0x15   : > { %1019 = vmatpush3.bf16.msra.mxu0 %v1124_v9 }
  0x18   : > { %1021 = vmatmul.mubr.msk.bf16.vlgmr.msra.gmra.mrb[0].mxu0 %vm271_vm1, %v238_v10 }
  0xe8   : > { %320 = sbr.rel (!%p315_p4) target bundleno = 239 (0xef), region = 44 }
  0xeb   : > { %v1270_v11 = vpop.f32.mrb[0].mxu0 }
  0xec   : > { %v1022_v12 = vpop.f32.mrb[1].mxu0 }
  0xed   : > { %v312_v13 = vpop.f32.mrb[2].mxu0 }
  0xee   : > { %v1023_v14 = vpop.f32.mrb[3].mxu0 }
  0xef PF: > { %p963_p5 = scmp.ne.s32.totalorder %s1148_s18, 0 }
  0xf0   : > { %v404_v16 = vmul.f32 (!%p963_p5), %v1270_v11, %v1270_v11  ;;  %v1161_v17 = vmov (!%p963_p5), 0.0   ;;  %vm326_vm2 = vcmask (!%p963_p5), 64512   ;;  %vm1162_vm3 = vmmov (!%p963_p5), 0   ;;  %v325_v19 = vld [vmem:[#allocation2] sm:$0x1] (!%p963_p5) }
  0xf1   : > { %324 = sbr.rel (%p963_p5) target bundleno = 459 (0x1cb), region = 48  ;;  %1024 = vmatprep.subr.mxu0 (!%p963_p5), %v1161_v17  ;;  %1029 = vmatprep.subr.mxu1 (!%p963_p5), %v1161_v17  ;;  %v1163_v18 = vmov (!%p963_p5), 1.0   ;;  %v403_v20 = vld [vmem:[#allocation2 + $0x1] sm:$0x1] (!%p963_p5)  ;;  %vm401_vm4 = vcmask (!%p963_p5), 401408  }
  0xf2   : > { %1025 = vmatpush3.msra.mxu0 (!%p963_p5), %v1270_v11  ;;  %1026 = vmatprep.mubr.msk.f32.mxu0 (!%p963_p5), %vm1162_vm3, %v1161_v17 }
  0xf3   : > { %1030 = vmatpush3.msra.mxu1 (!%p963_p5), %v404_v16  ;;  %1031 = vmatprep.mubr.msk.f32.mxu1 (!%p963_p5), %vm1162_vm3, %v1161_v17 }
  0xf4   : > { %1027 = vmatmul.mubr.msk.f32.vlgmr.msra.gmra.mrb[0].mxu0 (!%p963_p5), %vm326_vm2, %v1163_v18  ;;  %1032 = vmatmul.mubr.msk.f32.vlgmr.msra.gmra.mrb[0].mxu1 (!%p963_p5), %vm326_vm2, %v1163_v18 }
 0x1c7   : > { %v396_v21 = vpop.f32.mrb[0].mxu0  ;;  %v471_v22 = vpop.f32.mrb[0].mxu1 }
 0x1c8   : > { %v400_v23 = vadd.f32 %v396_v21, %v325_v19  ;;  %v475_v24 = vadd.f32 %v471_v22, %v403_v20  ;;  %v1028_v25 = vpop.f32.mrb[1].mxu0  ;;  %v1033_v26 = vpop.f32.mrb[1].mxu1 }
 0x1ca   : > { %402 = vst.msk [vmem:[#allocation2] sm:$0x1] %vm401_vm4, %v400_v23  ;;  %476 = vst.msk [vmem:[#allocation2 + $0x1] sm:$0x1] %vm401_vm4, %v475_v24 }
 0x1cb PF: > { %p477_p6 = scmp.eq.s32.totalorder %s1148_s18, 1 }
 0x1cc   : > { %vm491_vm5 = vcmask (%p477_p6), 401408  }
 0x1cd   : > { %481 = sbr.rel (!%p477_p6) target bundleno = 492 (0x1ec), region = 52 }
 0x1d1   : > { %v482_v27 = vld [vmem:[#allocation2] sm:$0x1] (%p477_p6)  ;;  %v484_v28 = vld [vmem:[#allocation2 + $0x1] sm:$0x1] (%p477_p6) }
 0x1d2   : > { %v483_v29 = vmul.f32 (%p477_p6), 0.125, %v482_v27  ;;  %v485_v30 = vmul.f32 (%p477_p6), 0.125, %v484_v28 }
 0x1d4   : > { %v486_v31 = vmul.f32 %v483_v29, %v483_v29 }
 0x1d6   : > { %v487_v32 = vsub.f32 %v485_v30, %v486_v31 }
 0x1d8   : > { %v488_v33 = vadd.f32 1e-05, %v487_v32 }
 0x1da   : > { %1125 = vrsqrt.f32 %v488_v33 }
 0x1e4   : > { %v1126_v34 = vpop.eup %1125 }
 0x1e5   : > { %v490_v35 = vmul.f32 %v1126_v34, %v1226_v0 }
 0x1e7   : > { %492 = vst.msk [vmem:[#allocation2 + $0x4] sm:$0x1] %vm491_vm5, %v490_v35  ;;  %v493_v36 = vmul.f32 %v490_v35, %v483_v29 }
 0x1e9   : > { %v494_v37 = vsub.f32 %v1231_v1, %v493_v36 }
 0x1eb   : > { %495 = vst.msk [vmem:[#allocation2 + $0x5] sm:$0x1] %vm491_vm5, %v494_v37 }
 0x1ec PF: > { %v509_v38 = vld [vmem:[%s1333_s2] sm:$0xff]  ;;  %v510_v39 = vld [vmem:[%s1333_s2 + $0x8] sm:$0xff]  ;;  %v511_v40 = vld [vmem:[%s1333_s2 + $0x10] sm:$0xff]  ;;  %1048 = vmatprep.mubr.msk.f32.mxu0 %vm1159_vm0, %v1158_v6  ;;  %v1164_v41 = vmov 0.0|0.0   ;;  %vm520_vm6 = vcmask 1041408   ;;  %vm516_vm7 = vcmask 408576  }
 0x1ed   : > { %1070 = vmatprep.subr.bf16.mxu0 %v1164_v41  ;;  %v1071_v42 = vpack.c.bf16 %v510_v39, %v509_v38  ;;  %v512_v43 = vld [vmem:[%s1333_s2 + $0x18] sm:$0xff]  ;;  %v513_v46 = vld [vmem:[%s1333_s2 + $0x20] sm:$0xff]  ;;  %v514_v47 = vld [vmem:[%s1333_s2 + $0x28] sm:$0xff]  ;;  %p971_p7 = scmp.ne.s32.totalorder %s1148_s18, 1 }
 0x1ee   : > { %v967_v44 = vld [vmem:[#allocation2 + $0x4] ss:$0 sm:$0xff]  ;;  %v1074_v45 = vpack.c.bf16 %v512_v43, %v511_v40  ;;  %v1077_v50 = vpack.c.bf16 %v514_v47, %v513_v46  ;;  %v515_v52 = vld [vmem:[%s1333_s2 + $0x30] sm:$0x3]  ;;  %v1165_v57 = vmov (!%p971_p7), 0.0   ;;  %vm598_vm8 = vcmask (!%p971_p7), 64512  }
 0x1ef   : > { %1072 = vmatpush3.bf16.msra.mxu0 %v1071_v42  ;;  %v501_v48 = vmul.f32 %v967_v44, %v1270_v11  ;;  %1056 = vmatprep.subr.mxu1 (!%p971_p7), %v1165_v57  ;;  %vm1166_vm9 = vmmov (!%p971_p7), 0   ;;  %v1167_v58 = vmov (!%p971_p7), 1.0   ;;  %v597_v59 = vld [vmem:[#allocation2 + $0x2] sm:$0x1] (!%p971_p7)  ;;  %v675_v60 = vld [vmem:[#allocation2 + $0x3] sm:$0x1] (!%p971_p7) }
 0x1f0   : > { %1073 = vmatprep.subr.bf16.mxu0 %v1164_v41  ;;  %1058 = vmatprep.mubr.msk.f32.mxu1 (!%p971_p7), %vm1166_vm9, %v1165_v57  ;;  %vm673_vm10 = vcmask (!%p971_p7), 155648  }
 0x1f2   : > { %v968_v49 = vld [vmem:[#allocation2 + $0x5] ss:$0 sm:$0xff] }
 0x1f3   : > { %1075 = vmatpush3.bf16.msra.mxu0 %v1074_v45  ;;  %v507_v51 = vadd.f32 %v968_v49, %v501_v48 }
 0x1f4   : > { %1076 = vmatprep.subr.bf16.mxu0 %v1164_v41 }
 0x1f5   : > { %v508_v53 = vmax.f32 %v507_v51, 0.0 }
 0x1f7   : > { %1078 = vmatpush3.bf16.msra.mxu0 %v1077_v50 }
 0x1f8   : > { %1046 = vmatprep.subr.mxu0 %v1158_v6 }
 0x1fb   : > { %1047 = vmatpush3.msk.msra.mxu0 %vm520_vm6, %v515_v52 }
 0x1fc   : > { %1049 = vmatmul.mubr.msk.f32.vlgmr.msra.gmra.mrb[0].mxu0 %vm516_vm7, %v508_v53  ;;  %1051 = vmatprep.subr.mxu0 (!%p971_p7), %v1165_v57 }
 0x1fd   : > { %1053 = vmatprep.mubr.msk.f32.mxu0 (!%p971_p7), %vm1166_vm9, %v1165_v57 }
 0x2ca   : > { %596 = sbr.rel (%p971_p7) target bundleno = 938 (0x3aa), region = 56 }
 0x2cf   : > { %v590_v54 = vpop.f32.mrb[0].mxu0 }
 0x2d0   : > { %v1050_v55 = vpop.f32.mrb[1].mxu0  ;;  %v676_v56 = vmul.f32 (!%p971_p7), %v590_v54, %v590_v54  ;;  %1052 = vmatpush3.msra.mxu0 (!%p971_p7), %v590_v54 }
 0x2d1   : > { %1054 = vmatmul.mubr.msk.f32.vlgmr.msra.gmra.mrb[0].mxu0 %vm598_vm8, %v1167_v58 }
 0x2d2   : > { %1057 = vmatpush3.msra.mxu1 %v676_v56 }
 0x2d3   : > { %1059 = vmatmul.mubr.msk.f32.vlgmr.msra.gmra.mrb[0].mxu1 %vm598_vm8, %v1167_v58 }
 0x3a4   : > { %v668_v61 = vpop.f32.mrb[0].mxu0 }
 0x3a5   : > { %v672_v63 = vadd.f32 %v668_v61, %v597_v59  ;;  %v1055_v1 = vpop.f32.mrb[1].mxu0 }
 0x3a6   : > { %v743_v62 = vpop.f32.mrb[0].mxu1 }
 0x3a7   : > { %v747_v0 = vadd.f32 %v743_v62, %v675_v60  ;;  %v1060_v5 = vpop.f32.mrb[1].mxu1  ;;  %674 = vst.msk [vmem:[#allocation2 + $0x2] sm:$0x1] %vm673_vm10, %v672_v63 }
 0x3a9   : > { %748 = vst.msk [vmem:[#allocation2 + $0x3] sm:$0x1] %vm673_vm10, %v747_v0 }
 0x3aa PF: > { %p749_p8 = scmp.eq.s32.totalorder %s1148_s18, 2 }
 0x3ab   : > { %vm763_vm11 = vcmask (%p749_p8), 155648  }
 0x3ac   : > { %753 = sbr.rel (!%p749_p8) target bundleno = 969 (0x3c9), region = 60 }
 0x3ae   : > { %v754_v6 = vld [vmem:[#allocation2 + $0x2] sm:$0x1] (%p749_p8) }
 0x3af   : > { %v755_v8 = vmul.f32 (%p749_p8), 0.125, %v754_v6 }
 0x3b0   : > { %v756_v7 = vld [vmem:[#allocation2 + $0x3] sm:$0x1] (%p749_p8) }
 0x3b1   : > { %v757_v9 = vmul.f32 (%p749_p8), 0.125, %v756_v7  ;;  %v758_v10 = vmul.f32 (%p749_p8), %v755_v8, %v755_v8 }
 0x3b3   : > { %v759_v11 = vsub.f32 %v757_v9, %v758_v10 }
 0x3b5   : > { %v760_v12 = vadd.f32 1e-05, %v759_v11 }
 0x3b7   : > { %1127 = vrsqrt.f32 %v760_v12 }
 0x3c1   : > { %v1128_v13 = vpop.eup %1127 }
 0x3c2   : > { %v762_v14 = vmul.f32 %v1128_v13, %v1236_v2 }
 0x3c4   : > { %764 = vst.msk [vmem:[#allocation2 + $0x6] sm:$0x1] %vm763_vm11, %v762_v14  ;;  %v765_v15 = vmul.f32 %v762_v14, %v755_v8 }
 0x3c6   : > { %v766_v16 = vsub.f32 %v1241_v3, %v765_v15 }
 0x3c8   : > { %767 = vst.msk [vmem:[#allocation2 + $0x7] sm:$0x1] %vm763_vm11, %v766_v16 }
 0x3c9 PF: > { %p975_p9 = scmp.ne.s32.totalorder %s1148_s18, 2 }
 0x3ca   : > { %v784_v17 = vld [vmem:[%s1334_s3] sm:$0xff] (!%p975_p9)  ;;  %v785_v18 = vld [vmem:[%s1334_s3 + $0x8] sm:$0xff] (!%p975_p9)  ;;  %v1168_v19 = vmov (!%p975_p9), 0.0|0.0   ;;  %vm1169_vm12 = vmmov (!%p975_p9), 0   ;;  %v1170_v3 = vmov (!%p975_p9), 0.0   ;;  %vm795_vm13 = vcmask (!%p975_p9), 1043456  }
 0x3cb   : > { %770 = sbr.rel (%p975_p9) target bundleno = 1476 (0x5c4), region = 64  ;;  %1079 = vmatprep.subr.bf16.mxu0 (!%p975_p9), %v1168_v19  ;;  %v1080_v2 = vpack.c.bf16 (!%p975_p9), %v785_v18, %v784_v17  ;;  %v976_v20 = vld [vmem:[#allocation2 + $0x6] ss:$0 sm:$0xff] (!%p975_p9)  ;;  %1067 = vmatprep.mubr.msk.f32.mxu0 (!%p975_p9), %vm1169_vm12, %v1170_v3  ;;  %v786_v23 = vld [vmem:[%s1334_s3 + $0x10] sm:$0xf] (!%p975_p9)  ;;  %vm791_vm14 = vcmask (!%p975_p9), 162816  }
 0x3cc   : > { %v776_v22 = vmul.f32 (!%p975_p9), %v976_v20, %v590_v54  ;;  %s1171_s15 = smov (!%p975_p9), 127   ;;  %v1172_v29 = vmov (!%p975_p9), 0   ;;  %vm889_vm15 = vcmask (!%p975_p9), 15360  }
 0x3cd   : > { %1081 = vmatpush3.bf16.msra.mxu0 (!%p975_p9), %v1080_v2  ;;  %1129 = vset.pattern.permute.xlu0 (!%p975_p9), %v1172_v29 }
 0x3ce   : > { %1065 = vmatprep.subr.mxu0 (!%p975_p9), %v1170_v3 }
 0x3cf   : > { %v977_v21 = vld [vmem:[#allocation2 + $0x7] ss:$0 sm:$0xff] (!%p975_p9) }
 0x3d0   : > { %v782_v24 = vadd.f32 (!%p975_p9), %v977_v21, %v776_v22 }
 0x3d1   : > { %1066 = vmatpush3.msk.msra.mxu0 (!%p975_p9), %vm795_vm13, %v786_v23 }
 0x3d2   : > { %v783_v25 = vmax.f32 %v782_v24, 0.0 }
 0x3d4   : > { %1068 = vmatmul.mubr.msk.f32.vlgmr.msra.gmra.mrb[0].mxu0 %vm791_vm14, %v783_v25 }
 0x4a7   : > { %v865_v26 = vpop.f32.mrb[0].mxu0 }
 0x4a8   : > { %v866_v27 = vadd.f32 %v1246_v4, %v865_v26  ;;  %v1069_v28 = vpop.f32.mrb[1].mxu0 }
 0x4aa   : > { %870 = vrot.lane.b32.xlu0 %v866_v27, %s1171_s15 }
 0x51c   : > { %v871_v30 = vpop.permute.xlu0 %870 }
 0x51d   : > { %v874_v31 = vsub.f32 %v866_v27, %v871_v30  ;;  %v873_v38 = vmax.f32 %v866_v27, %v871_v30 }
 0x51f   : > { %v875_v32 = vand.u32 2147483647, %v874_v31 }
 0x521   : > { %v876_v33 = vsub.f32 0.0, %v875_v32 }
 0x523   : > { %v877_v34 = vmul.f32 1.442695, %v876_v33 }
 0x525   : > { %1130 = vpow2.f32 %v877_v34 }
 0x52f   : > { %v1131_v35 = vpop.eup %1130 }
 0x530   : > { %v879_v36 = vadd.f32 1.0, %v1131_v35 }
 0x532   : > { %1132 = vlog2.f32 %v879_v36 }
 0x53c   : > { %v1133_v37 = vpop.eup %1132 }
 0x53d   : > { %v881_v39 = vmul.f32 0.6931472, %v1133_v37 }
 0x53f   : > { %v882_v40 = vadd.f32 %v881_v39, %v873_v38 }
 0x541   : > { %885 = vperm.xlu0 %1129, %v882_v40  }
 0x5c0   : > { %v886_v4 = vpop.permute.xlu0 %885 }
 0x5c1   : > { %v888_v41 = vsub.f32 %v866_v27, %v886_v4 }
 0x5c3   : > { %890 = vst.msk [vmem:[%s1336_s5] sm:$0xff] %vm889_vm15, %v888_v41 }
 0x5c4 PF: > { %s15_s20 = sadd.s32 1, %s1156_s20   ;;  %s1337_s18 = smov %s1152_s19 }
 0x5c5   : > { %p12_p10 = scmp.ge.s32.totalorder %s15_s20, 5   ;;  %s1338_s19 = smov %s1340_s21 }
 0x5c7   :  { %14 = sbr.rel (!%p12_p10) target bundleno = 2 (0x2), region = 94 }

</bundles_post_ra>
